<compile_context>
chip_gen: v6e
topology: v6e:2x2x1
jax: 0.10.0
libtpu: 0.0.40
codegen_flags: <defaults>
</compile_context>

<pallas_src>
import functools

import jax
import jax.numpy as jnp
from jax import lax
from jax.experimental import pallas as pl
from jax.experimental.pallas import tpu as pltpu


# --------------------------- generation-aware sizing ------------------------ #

def _vmem_capacity_bytes():
    try:
        return int(pltpu.get_tpu_info().vmem_capacity_bytes)
    except Exception:
        return 64 * 1024 * 1024  # conservative (v7x per-TC VMEM)


_VMEM_CAP = _vmem_capacity_bytes()
# Scoped VMEM limit: 3/4 of physical -> 48 MiB on v7x, 96 MiB on v5e/v6e.
_VMEM_LIMIT_BYTES = min((_VMEM_CAP * 3) // 4, 100 * 1024 * 1024)
# Block size in ELEMENTS (dtype-independent: the in-kernel f32 working set is the
# real VMEM consumer).  ~4 MiB f32 blocks on 64-MiB chips, ~8 MiB on 128-MiB chips.
_TARGET_BLOCK_ELEMS = (2 * 1024 * 1024) if _VMEM_CAP >= 128 * 1024 * 1024 else (1 * 1024 * 1024)


def _round_up(x, m):
    return ((x + m - 1) // m) * m


def _fits_vmem(elems_per_block, itemsize):
    # 2 double-buffered inputs + 2 outputs at input dtype + ~3 f32-sized live temps.
    return elems_per_block * (4 * itemsize + 12) <= _VMEM_LIMIT_BYTES


# --------------------------------- kernels ---------------------------------- #

def _ln_rows_kernel(x_ref, w_ref, b_ref, o_ref, *, eps):
    # x_ref: (tm, C); normalize each row over the last dim (biased variance).
    x = x_ref[...].astype(jnp.float32)
    u = jnp.mean(x, axis=-1, keepdims=True)
    xc = x - u
    s = jnp.mean(xc * xc, axis=-1, keepdims=True)
    y = xc * lax.rsqrt(s + eps)
    o_ref[...] = (y * w_ref[...] + b_ref[...]).astype(o_ref.dtype)


def _ln_axis0_kernel(x_ref, w_ref, b_ref, o_ref, *, eps):
    # x_ref: (C, T) with T on the 128-wide lane axis; normalize each column over C.
    x = x_ref[...].astype(jnp.float32)
    u = jnp.mean(x, axis=0, keepdims=True)
    xc = x - u
    s = jnp.mean(xc * xc, axis=0, keepdims=True)
    y = xc * lax.rsqrt(s + eps)
    o_ref[...] = (w_ref[...] * y + b_ref[...]).astype(o_ref.dtype)


def _ln_lane_groups_kernel(x_ref, seg_ref, w_ref, b_ref, o_ref, *, c, eps):
    # x_ref: (tr, 128). Each 128-lane row holds 128//c complete logical rows of
    # length c (row-major flattening; 128 % c == 0).  seg_ref is the constant
    # 128x128 block-diagonal ones matrix: one MXU matmul computes the per-group
    # sum broadcast back to every lane of its group.
    x = x_ref[...].astype(jnp.float32)
    seg = seg_ref[...]
    inv_c = 1.0 / c
    u = jnp.dot(x, seg, preferred_element_type=jnp.float32,
                precision=lax.Precision.HIGHEST) * inv_c
    xc = x - u
    s = jnp.dot(xc * xc, seg, preferred_element_type=jnp.float32,
                precision=lax.Precision.HIGHEST) * inv_c
    y = xc * lax.rsqrt(s + eps)
    o_ref[...] = (y * w_ref[...] + b_ref[...]).astype(o_ref.dtype)


# --------------------------- plain-JAX fallbacks/refs ------------------------ #

def _layer_norm_last_jnp(x, weight, bias, eps):
    xf = x.astype(jnp.float32)
    u = jnp.mean(xf, axis=-1, keepdims=True)
    s = jnp.mean((xf - u) ** 2, axis=-1, keepdims=True)
    y = (xf - u) * lax.rsqrt(s + eps)
    return (y * weight.astype(jnp.float32) + bias.astype(jnp.float32)).astype(x.dtype)


def _layer_norm_channel_jnp(x, weight, bias, eps):
    xf = x.astype(jnp.float32)
    u = jnp.mean(xf, axis=1, keepdims=True)
    s = jnp.mean((xf - u) ** 2, axis=1, keepdims=True)
    y = (xf - u) * lax.rsqrt(s + eps)
    bshape = (1, x.shape[1]) + (1,) * (x.ndim - 2)
    return (weight.astype(jnp.float32).reshape(bshape) * y
            + bias.astype(jnp.float32).reshape(bshape)).astype(x.dtype)


# ------------------------------ pallas wrappers ------------------------------ #

def _ln_rows_pallas(xm, weight, bias, eps):
    """xm: (M, C); normalize every row over C.  No padding: edge blocks handled
    by Pallas (partial last block, OOB writes dropped)."""
    M, C = xm.shape
    itemsize = xm.dtype.itemsize

    if not _fits_vmem(8 * C, itemsize):
        # TODO(synk): split C onto an 'arbitrary' grid axis with a running sum/sumsq VMEM accumulator for very large normShape; plain-JAX fallback keeps it correct.
        return _layer_norm_last_jnp(xm, weight, bias, eps)

    if M <= 8:
        block_rows = M
    else:
        desired = max(8, min(_TARGET_BLOCK_ELEMS // C, M))
        block_rows = _round_up(desired, 8)
        if block_rows >= M:  # keep >= 2 grid steps so both v7x TensorCores get work
            block_rows = _round_up(pl.cdiv(M, 2), 8)
        while block_rows > 8 and not _fits_vmem(block_rows * C, itemsize):
            block_rows = max(8, _round_up(block_rows // 2, 8))
    n_blocks = pl.cdiv(M, block_rows)

    w2 = weight.astype(jnp.float32).reshape(1, C)
    b2 = bias.astype(jnp.float32).reshape(1, C)

    return pl.pallas_call(
        functools.partial(_ln_rows_kernel, eps=eps),
        out_shape=jax.ShapeDtypeStruct((M, C), xm.dtype),
        grid_spec=pltpu.PrefetchScalarGridSpec(
            num_scalar_prefetch=0,
            grid=(n_blocks,),
            in_specs=[
                pl.BlockSpec((block_rows, C), lambda i: (i, 0)),
                pl.BlockSpec((1, C), lambda i: (0, 0)),
                pl.BlockSpec((1, C), lambda i: (0, 0)),
            ],
            out_specs=pl.BlockSpec((block_rows, C), lambda i: (i, 0)),
        ),
        compiler_params=pltpu.CompilerParams(
            dimension_semantics=("parallel",),
            vmem_limit_bytes=_VMEM_LIMIT_BYTES,
        ),
    )(xm, w2, b2)


def _ln_lane_groups_pallas(xm, weight, bias, eps):
    """xm: (M, C) with C < 128, 128 % C == 0 and (M*C) % 128 == 0.
    Free row-major reinterpretation as (M*C/128, 128); per-row reduction over
    aligned groups of C consecutive lanes via an MXU segment-sum."""
    M, C = xm.shape
    G = 128 // C
    R = (M * C) // 128
    itemsize = xm.dtype.itemsize
    xr = xm.reshape(R, 128)  # contiguous row-major reshape: no HBM data movement

    if R <= 8:
        block_rows = R
    else:
        desired = max(8, min(_TARGET_BLOCK_ELEMS // 128, R))
        block_rows = _round_up(desired, 8)
        if block_rows >= R:  # keep >= 2 grid steps for megacore
            block_rows = _round_up(pl.cdiv(R, 2), 8)
        while block_rows > 8 and not _fits_vmem(block_rows * 128, itemsize):
            block_rows = max(8, _round_up(block_rows // 2, 8))
    n_blocks = pl.cdiv(R, block_rows)

    # Constant block-diagonal ones matrix: seg[i, j] = 1  iff  i//C == j//C.
    grp = jnp.arange(128, dtype=jnp.int32) // C
    seg = (grp[:, None] == grp[None, :]).astype(jnp.float32)
    w_t = jnp.tile(weight.astype(jnp.float32), G).reshape(1, 128)
    b_t = jnp.tile(bias.astype(jnp.float32), G).reshape(1, 128)

    out = pl.pallas_call(
        functools.partial(_ln_lane_groups_kernel, c=C, eps=eps),
        out_shape=jax.ShapeDtypeStruct((R, 128), xm.dtype),
        grid_spec=pltpu.PrefetchScalarGridSpec(
            num_scalar_prefetch=0,
            grid=(n_blocks,),
            in_specs=[
                pl.BlockSpec((block_rows, 128), lambda i: (i, 0)),
                pl.BlockSpec((128, 128), lambda i: (0, 0)),   # constant: fetched once
                pl.BlockSpec((1, 128), lambda i: (0, 0)),
                pl.BlockSpec((1, 128), lambda i: (0, 0)),
            ],
            out_specs=pl.BlockSpec((block_rows, 128), lambda i: (i, 0)),
        ),
        compiler_params=pltpu.CompilerParams(
            dimension_semantics=("parallel",),
            vmem_limit_bytes=_VMEM_LIMIT_BYTES,
        ),
    )(xr, seg, w_t, b_t)
    return out.reshape(M, C)


def _ln_axis0_pallas(x3, weight, bias, eps):
    """x3: (B, C, N); normalize over axis 1 (C) for every (b, n) column.
    N rides the 128-wide lane axis; no padding (edge lane-tiles handled by Pallas)."""
    B, C, N = x3.shape
    itemsize = x3.dtype.itemsize
    c_pad = max(C, 8)  # sublanes pad to 8 in VMEM

    if not _fits_vmem(c_pad * 128, itemsize):
        # TODO(synk): add a C-split ('arbitrary' axis + running sum/sumsq scratch) for very large channel counts.
        return _layer_norm_channel_jnp(x3, weight, bias, eps)

    if N <= 128:
        t_tile = N
    else:
        # If B == 1, force >= 2 lane tiles so both v7x TensorCores get work.
        max_tile = _round_up(pl.cdiv(N, 2), 128) if B == 1 else N
        desired = max(128, _TARGET_BLOCK_ELEMS // c_pad)
        t_tile = min(_round_up(desired, 128), max_tile)
        if t_tile >= N:
            t_tile = N
        while t_tile > 128 and not _fits_vmem(c_pad * t_tile, itemsize):
            t_tile = max(128, _round_up(t_tile // 2, 128))
    n_tiles = pl.cdiv(N, t_tile)

    w2 = weight.astype(jnp.float32).reshape(C, 1)
    b2 = bias.astype(jnp.float32).reshape(C, 1)

    return pl.pallas_call(
        functools.partial(_ln_axis0_kernel, eps=eps),
        out_shape=jax.ShapeDtypeStruct((B, C, N), x3.dtype),
        grid_spec=pltpu.PrefetchScalarGridSpec(
            num_scalar_prefetch=0,
            grid=(B, n_tiles),
            in_specs=[
                pl.BlockSpec((pl.Squeezed(), C, t_tile), lambda b, j: (b, 0, j)),
                pl.BlockSpec((C, 1), lambda b, j: (0, 0)),
                pl.BlockSpec((C, 1), lambda b, j: (0, 0)),
            ],
            out_specs=pl.BlockSpec((pl.Squeezed(), C, t_tile), lambda b, j: (b, 0, j)),
        ),
        compiler_params=pltpu.CompilerParams(
            dimension_semantics=("parallel", "parallel"),
            vmem_limit_bytes=_VMEM_LIMIT_BYTES,
        ),
    )(x3, w2, b2)


# ----------------------------- module-level API ------------------------------ #

def layer_norm_channel_last(x, weight, bias, eps=1e-6):
    """'Channel_Last': x (..., C); weight/bias (C,); normalize over the last dim."""
    C = x.shape[-1]
    orig_shape = x.shape
    xm = x.reshape(-1, C)       # free (row-major) reshape
    M = xm.shape[0]
    if C < 128 and (128 % C == 0) and ((M * C) % 128 == 0):
        # Small C: lane-dense reinterpretation + in-kernel MXU segment reduce
        # (no wrapper transposes, no extra HBM passes).
        out = _ln_lane_groups_pallas(xm, weight, bias, eps)
    else:
        # C >= 128 (lane-dense rows), or ragged small-C fallback (rare).
        out = _ln_rows_pallas(xm, weight, bias, eps)
    return out.reshape(orig_shape)


def layer_norm_channel_first(x, weight, bias, eps=1e-6):
    """'Channel_First': x NCHW (B, C, H, W); weight/bias (C,); normalize over channels."""
    B, C, H, W = x.shape
    x3 = x.reshape(B, C, H * W)  # free reshape: H*W rides the 128-wide lane axis
    out3 = _ln_axis0_pallas(x3, weight, bias, eps)
    return out3.reshape(B, C, H, W)


# ----------------------------------- main ------------------------------------ #

if __name__ == "__main__":
    key = jax.random.PRNGKey(0)
    k1, k2, k3, k4, k5, k6, k7, k8 = jax.random.split(key, 8)

    eps = 1e-6  # module default (module passes 1e-6 into F.layer_norm)

    B, C, H, W = 2, 4, 16, 16
    weight = jnp.ones((C,), jnp.float32) + 0.1 * jax.random.normal(k3, (C,), jnp.float32)
    bias = 0.1 * jax.random.normal(k4, (C,), jnp.float32)

    # ---- Channel_Last, small C (lane-group MXU path): input (B, H, W, C) ----
    x_last = jax.random.normal(k1, (B, H, W, C), jnp.float32)
    out_last = jax.block_until_ready(layer_norm_channel_last(x_last, weight, bias, eps))
    ref_last = _layer_norm_last_jnp(x_last, weight, bias, eps)
    assert jnp.allclose(out_last, ref_last, atol=1e-5, rtol=1e-5), "Channel_Last (C=4) mismatch"

    # ---- Channel_Last, C >= 128 with ragged row count (edge-block path) ----
    C2, S = 128, 9
    w2 = jnp.ones((C2,), jnp.float32) + 0.1 * jax.random.normal(k5, (C2,), jnp.float32)
    b2 = 0.1 * jax.random.normal(k6, (C2,), jnp.float32)
    x_seq = jax.random.normal(k7, (B, S, C2), jnp.float32)
    out_seq = jax.block_until_ready(layer_norm_channel_last(x_seq, w2, b2, eps))
    ref_seq = _layer_norm_last_jnp(x_seq, w2, b2, eps)
    assert jnp.allclose(out_seq, ref_seq, atol=1e-5, rtol=1e-5), "Channel_Last (C=128) mismatch"

    # ---- Channel_Last, small C with M*C not a multiple of 128 (narrow fallback) ----
    x_odd = jax.random.normal(k8, (2, 5, 3, C), jnp.float32)
    out_odd = jax.block_until_ready(layer_norm_channel_last(x_odd, weight, bias, eps))
    ref_odd = _layer_norm_last_jnp(x_odd, weight, bias, eps)
    assert jnp.allclose(out_odd, ref_odd, atol=1e-5, rtol=1e-5), "Channel_Last (ragged) mismatch"

    # ---- Channel_First: input NCHW (B, C, H, W), norm over C (axis 1) ----
    x_first = jax.random.normal(k2, (B, C, H, W), jnp.float32)
    out_first = jax.block_until_ready(layer_norm_channel_first(x_first, weight, bias, eps))
    ref_first = _layer_norm_channel_jnp(x_first, weight, bias, eps)
    assert jnp.allclose(out_first, ref_first, atol=1e-5, rtol=1e-5), "Channel_First mismatch"

    print("KERNEL_OK")
</pallas_src>

<mosaic_0001>
module attributes {stable_mosaic.version = 11 : i64} {
  func.func @_ln_lane_groups_kernel(%arg0: i32, %arg1: memref<8x128xf32, #tpu.memory_space<vmem>>, %arg2: memref<128x128xf32, #tpu.memory_space<vmem>>, %arg3: memref<1x128xf32, #tpu.memory_space<vmem>>, %arg4: memref<1x128xf32, #tpu.memory_space<vmem>>, %arg5: memref<8x128xf32, #tpu.memory_space<vmem>>) attributes {dimension_semantics = [#tpu.dimension_semantics<parallel>], iteration_bounds = array<i64: 2>, scalar_prefetch = 0 : i64, scratch_operands = 0 : i64, tpu.core_type = #tpu.core_type<tc>, window_params = [{transform_indices = @transform_0, window_bounds = array<i64: 8, 128>}, {pipeline_mode = #tpu.pipeline_mode<synchronous>, transform_indices = @transform_1, window_bounds = array<i64: 128, 128>}, {pipeline_mode = #tpu.pipeline_mode<synchronous>, transform_indices = @transform_2, window_bounds = array<i64: 1, 128>}, {pipeline_mode = #tpu.pipeline_mode<synchronous>, transform_indices = @transform_3, window_bounds = array<i64: 1, 128>}, {transform_indices = @transform_4, window_bounds = array<i64: 8, 128>}]} {
    %c0 = arith.constant 0 : index
    %c0_0 = arith.constant 0 : index
    %0 = vector.load %arg1[%c0, %c0_0] : memref<8x128xf32, #tpu.memory_space<vmem>>, vector<8x128xf32>
    %c0_1 = arith.constant 0 : index
    %c0_2 = arith.constant 0 : index
    %1 = vector.load %arg2[%c0_1, %c0_2] : memref<128x128xf32, #tpu.memory_space<vmem>>, vector<128x128xf32>
    %cst = arith.constant dense<0.000000e+00> : vector<8x128xf32>
    %2 = tpu.matmul %0, %1, %cst {dimension_numbers = #tpu.dot_dimension_numbers<[1], [0], [0], [1], [0, 0, 1, 1], [], []>, precision = #tpu.contract_precision<fp32>} : vector<8x128xf32>, vector<128x128xf32>, vector<8x128xf32> -> vector<8x128xf32>
    %cst_3 = arith.constant 2.500000e-01 : f32
    %3 = vector.broadcast %cst_3 : f32 to vector<8x128xf32>
    %4 = arith.mulf %2, %3 : vector<8x128xf32>
    %5 = arith.subf %0, %4 : vector<8x128xf32>
    %6 = arith.mulf %5, %5 : vector<8x128xf32>
    %cst_4 = arith.constant dense<0.000000e+00> : vector<8x128xf32>
    %7 = tpu.matmul %6, %1, %cst_4 {dimension_numbers = #tpu.dot_dimension_numbers<[1], [0], [0], [1], [0, 0, 1, 1], [], []>, precision = #tpu.contract_precision<fp32>} : vector<8x128xf32>, vector<128x128xf32>, vector<8x128xf32> -> vector<8x128xf32>
    %cst_5 = arith.constant 2.500000e-01 : f32
    %8 = vector.broadcast %cst_5 : f32 to vector<8x128xf32>
    %9 = arith.mulf %7, %8 : vector<8x128xf32>
    %cst_6 = arith.constant 9.99999997E-7 : f32
    %10 = vector.broadcast %cst_6 : f32 to vector<8x128xf32>
    %11 = arith.addf %9, %10 : vector<8x128xf32>
    %12 = math.rsqrt %11 : vector<8x128xf32>
    %13 = arith.mulf %5, %12 : vector<8x128xf32>
    %c0_7 = arith.constant 0 : index
    %c0_8 = arith.constant 0 : index
    %14 = vector.load %arg3[%c0_7, %c0_8] : memref<1x128xf32, #tpu.memory_space<vmem>>, vector<1x128xf32>
    %15 = vector.broadcast %14 : vector<1x128xf32> to vector<8x128xf32>
    %16 = arith.mulf %13, %15 : vector<8x128xf32>
    %c0_9 = arith.constant 0 : index
    %c0_10 = arith.constant 0 : index
    %17 = vector.load %arg4[%c0_9, %c0_10] : memref<1x128xf32, #tpu.memory_space<vmem>>, vector<1x128xf32>
    %18 = vector.broadcast %17 : vector<1x128xf32> to vector<8x128xf32>
    %19 = arith.addf %16, %18 : vector<8x128xf32>
    %c0_11 = arith.constant 0 : index
    %c0_12 = arith.constant 0 : index
    %20 = vector.load %arg5[%c0_11, %c0_12] : memref<8x128xf32, #tpu.memory_space<vmem>>, vector<8x128xf32>
    tpu.vector_store %arg5[%c0_11, %c0_12], %19 {strides = array<i32>} : memref<8x128xf32, #tpu.memory_space<vmem>>, vector<8x128xf32>,
    return
  }
  func.func @transform_0(%arg0: i32) -> (i32, i32) {
    %c0_i32 = arith.constant 0 : i32
    %c0_i32_0 = arith.constant 0 : i32
    return %arg0, %c0_i32 : i32, i32
  }
  func.func @transform_1(%arg0: i32) -> (i32, i32) {
    %c0_i32 = arith.constant 0 : i32
    %c0_i32_0 = arith.constant 0 : i32
    %c0_i32_1 = arith.constant 0 : i32
    return %c0_i32, %c0_i32_0 : i32, i32
  }
  func.func @transform_2(%arg0: i32) -> (i32, i32) {
    %c0_i32 = arith.constant 0 : i32
    %c0_i32_0 = arith.constant 0 : i32
    %c0_i32_1 = arith.constant 0 : i32
    return %c0_i32, %c0_i32_0 : i32, i32
  }
  func.func @transform_3(%arg0: i32) -> (i32, i32) {
    %c0_i32 = arith.constant 0 : i32
    %c0_i32_0 = arith.constant 0 : i32
    %c0_i32_1 = arith.constant 0 : i32
    return %c0_i32, %c0_i32_0 : i32, i32
  }
  func.func @transform_4(%arg0: i32) -> (i32, i32) {
    %c0_i32 = arith.constant 0 : i32
    %c0_i32_0 = arith.constant 0 : i32
    return %arg0, %c0_i32 : i32, i32
  }
}

</mosaic_0001>

<bundles_post_ra>
// kernel: tpu_custom_call.1
= control target key start
LH: loop header
LB: loop body
LE: loop exit
PB: predicated region body
PF: predicated region fallthrough
CT: control target
= control target key end

     0   :  { %9 = vsyncpa [#allocation3], 0  ;;  %s3307_s0 = inlined_call_operand.hbm [shape: f32[16,128], index: 0, kind: input, shape index: {}]   ;;  %s3308_s1 = inlined_call_operand.hbm [shape: f32[128,128], index: 1, kind: input, shape index: {}]   ;;  %s3309_s2 = inlined_call_operand.vmem [shape: f32[1,128], index: 2, kind: input, shape index: {}]   ;;  %s3310_s3 = inlined_call_operand.vmem [shape: f32[1,128], index: 3, kind: input, shape index: {}]   ;;  %s3311_s4 = inlined_call_operand.hbm [shape: f32[16,128], index: 4, kind: output, shape index: {}]  }
   0x1   :  { %11 = vsyncpa [#allocation3 + $0x1], 0 }
   0x2   :  { %12 = vsyncpa [#allocation6], 0 }
   0x3   :  { %13 = vsyncpa [#allocation4], 0 }
   0x4   :  { %15 = vsyncpa [#allocation4 + $0x1], 0  ;;  %s2504_s15 = smov 0   ;;  %s2506_s16 = smov 0  }
   0x5   :  { %s2508_s17 = smov 0   ;;  %s2510_s18 = smov 0  }
   0x6 LB: > { %s2525_s19 = sadd.s32 4294967295, %s2470_s18   ;;  %s1645_s20 = sadd.s32 4294967294, %s2470_s18   ;;  %s2470_s18 = sphi %s2510_s18, %s3374_s18   ;;  %s2466_s17 = sphi %s2508_s17, %s3373_s17   ;;  %s2462_s16 = sphi %s2506_s16, %s3372_s16   ;;  %s2458_s15 = sphi %s2504_s15, %s3371_s15  }
   0x7   : > { %p41_p0 = scmp.ne.s32.totalorder %s2462_s16, %s2458_s15  ;;  %p3312_p1 = scmp.eq.s32.totalorder %s2525_s19, 0 }
   0x8   : > { %p134_p3 = scmp.eq.s32.totalorder %s1645_s20, 1  ;;  %p1646_p5 = scmp.ge.s32.totalorder %s2470_s18, 1 }
   0x9   : > { %p2534_p4 = por %p3312_p1, %p41_p0  ;;  %p141_p7 = scmp.lt.s32.totalorder %s2470_s18, 3 }
   0xa   : > { %p2539_p6 = por %p134_p3, %p41_p0  ;;  %s2472_s24 = smov [#allocation5]  }
   0xb   : > { %s3330_s21 = scalar_select %p2534_p4, 1, 0 }
   0xc   : > { %s3331_s22 = scalar_select %p2539_p6, 1, 0 }
   0xd   : > { %p2544_p8 = pnand %p1646_p5, %p141_p7  ;;  %s153_s25 = sshll.u32 %s2472_s24, 4  ;;  %s154_s25 = int_to_ptr.vmem [resolvable:$true] %s153_s25 }
   0xe   : > { %s2558_s27 = sadd.s32 1, %s2470_s18   ;;  %s28_s28 = sadd.s32 1, %s2466_s17 }
   0xf   : > { %s3332_s23 = scalar_select %p2544_p8, 1, 0 }
  0x10   : > { %p2293_p9 = pneg %p2544_p8  ;;  %s25_s29 = ssub.s32 %s2470_s18, %s2558_s27 }
  0x11   : > { %s2359_s30 = scalar_lea.vmem %s154_s25, 2048  ;;  %p2367_p5 = scmp.lt.s32.totalorder %s154_s25, %s154_s25 }
  0x12   : > { %p2553_p11 = pnand %p2293_p9, %p3312_p1  ;;  %p2360_p13 = scmp.ne.s32.totalorder %s154_s25, %s2359_s30 }
  0x13   : > { %p2368_p7 = scmp.lt.s32.totalorder %s2359_s30, %s2359_s30 }
  0x14   : > { %p2350_p12 = pneg %p2553_p11 }
  0x15   : > { %p2369_p10 = por %p2368_p7, %p2367_p5 }
  0x16   : > { %p2362_p0 = pnand %p2360_p13, %p2350_p12 }
  0x18   : > { %p2363_p3 = pneg %p2362_p0 }
  0x1a   : > { %p2370_p2 = pnand %p2369_p10, %p2363_p3 }
  0x1c   : > { %2373 = shalt.err (!%p2370_p2)
}
  0x1d   : > { %s2473_s5 = smov 128   ;;  %s2474_s6 = smov 8  }
  0x1e   : > { %2296 = dma.hbm_to_vmem [thread:$0]  (!%p2553_p11), %s3308_s1, 2048, %s154_s25, [#allocation6], %s2473_s5, %s2473_s5, %s2474_s6  }
  0x1f   : > { %p26_p9 = scmp.eq.s32.totalorder %s25_s29, 0  ;;  %p35_p12 = scmp.ne.s32.totalorder %s2466_s17, %s2462_s16 }
  0x20   : > { %p36_p10 = scmp.eq.s32.totalorder %s2470_s18, 0  ;;  %p2306_p2 = scmp.lt.s32.totalorder %s2470_s18, 2 }
  0x21   : > { %s2575_s9 = scalar_select %p26_p9, %s2466_s17, %s28_s28  }
  0x22   : > { %p37_p13 = por %p36_p10, %p35_p12  ;;  %p3334_p0 = scmp.eq.s32.totalorder %s2525_s19, 1 }
  0x23   : > { %s173_s11 = sand.u32 1, %s2466_s17   ;;  %s1650_s12 = sshll.u32 %s2470_s18, 7 }
  0x24   : > { %p2579_p3 = por %p3334_p0, %p35_p12  ;;  %s1649_s13 = sshll.u32 %s173_s11, 3 }
  0x25   : > { %s2588_s24 = scalar_lea.hbm %s3307_s0, %s1650_s12  ;;  %s177_s25 = scalar_lea.vmem [#allocation2], %s1649_s13 }
  0x26   : > { %s3335_s10 = scalar_select %p2579_p3, 1, 0 }
  0x27   : > { %s184_s26 = sshll.u32 %s177_s25, 4  ;;  %p2590_p11 = pnand %p2306_p2, %p37_p13  ;;  %s185_s26 = int_to_ptr.vmem [resolvable:$true] %s184_s26 }
  0x28   : > { %s174_s29 = scalar_lea.sflag [#allocation3], %s173_s11  ;;  %s2374_s30 = scalar_lea.hbm %s2588_s24, 128 }
  0x29   : > { %p2375_p5 = scmp.ne.s32.totalorder %s2588_s24, %s2374_s30  ;;  %p2376_p7 = pneg %p2590_p11 }
  0x2a   : > { %s2379_s7 = scalar_lea.hbm %s3307_s0, 256  ;;  %p2380_p10 = scmp.lt.s32.totalorder %s2588_s24, %s3307_s0 }
  0x2b   : > { %p2377_p9 = pnand %p2376_p7, %p2375_p5  ;;  %p2381_p2 = scmp.lt.s32.totalorder %s2379_s7, %s2374_s30 }
  0x2d   : > { %p2378_p12 = pneg %p2377_p9  ;;  %p2382_p13 = por %p2381_p2, %p2380_p10 }
  0x2f   : > { %p2383_p0 = pnand %p2382_p13, %p2378_p12 }
  0x31   : > { %2386 = shalt.err (!%p2383_p0)
}
  0x32   : > { %s2387_s13 = scalar_lea.vmem %s185_s26, 128  ;;  %s2475_s11 = smov [#allocation2]  }
  0x33   : > { %p2388_p1 = scmp.ne.s32.totalorder %s185_s26, %s2387_s13  ;;  %s2392_s14 = sshll.u32 %s2475_s11, 4  ;;  %s2393_s14 = int_to_ptr.vmem [resolvable:$false] %s2392_s14 }
  0x34   : > { %s2394_s20 = scalar_lea.vmem %s2393_s14, 256  ;;  %p2395_p5 = scmp.lt.s32.totalorder %s185_s26, %s2393_s14 }
  0x35   : > { %p2390_p6 = pnand %p2388_p1, %p2376_p7  ;;  %p2396_p9 = scmp.lt.s32.totalorder %s2394_s20, %s2387_s13 }
  0x37   : > { %p2391_p3 = pneg %p2390_p6  ;;  %p2397_p4 = por %p2396_p9, %p2395_p5 }
  0x39   : > { %p2398_p8 = pnand %p2397_p4, %p2391_p3 }
  0x3b   : > { %2401 = shalt.err (!%p2398_p8)
}
  0x3c   : > { %2300 = dma.hbm_to_vmem [thread:$0]  (!%p2590_p11), %s2588_s24, 128, %s185_s26, %s174_s29  }
  0x3d   : > { %p3337_p12 = scmp.ne.s32.totalorder %s3332_s23, 0 }
  0x3f   : > { %193 = sbr.rel (%p3337_p12) target bundleno = 696 (0x2b8), region = 36 }
  0x44   : > { %s2611_s25 = sand.u32 1, %s2462_s16   ;;  %p3338_p1 = scmp.ne.s32.totalorder %s3330_s21, 0 }
  0x45   : > { %s1652_s30 = sshll.u32 %s2611_s25, 3  ;;  %s196_s5 = scalar_lea.sflag [#allocation3], %s2611_s25 }
  0x46   : > { %s2617_s6 = scalar_lea.vmem [#allocation2], %s1652_s30 }
  0x47   : > { %2445 = dma.done.wait (%p3338_p1), %s196_s5, 128  }
  0x48   : > { %2447 = vsyncadd (%p3338_p1), %s196_s5, 4294967168  ;;  %p3339_p4 = scmp.eq.s32.totalorder %s2525_s19, 0 }
  0x4a   : > { %2449 = dma.done.wait (%p3339_p4), [#allocation6], 2048   ;;  %p3340_p6 = pmov %p3339_p4 }
  0x4b   : > { %v3328_v0 = vmov 0.0   ;;  %vm2477_vm0 = vmmov 0   ;;  %v244_v1 = vld [vmem:[#allocation5 + $0x78] sm:$0xff]  ;;  %v243_v2 = vld [vmem:[#allocation5 + $0x70] sm:$0xff]  ;;  %v242_v3 = vld [vmem:[#allocation5 + $0x68] sm:$0xff]  ;;  %s1658_s28 = sshll.u32 %s2525_s19, 7 }
  0x4c   : > { %2451 = vsyncadd (%p3340_p6), [#allocation6], 4294965248  ;;  %1865 = vmatprep.subr.mxu0 %v3328_v0  ;;  %1900 = vmatprep.subr.mxu1 %v3328_v0  ;;  %v2633_v4 = vand.u32 4294901760, %v244_v1  ;;  %v2635_v5 = vand.u32 4294901760, %v243_v2  ;;  %v2637_v6 = vand.u32 4294901760, %v242_v3  ;;  %v241_v7 = vld [vmem:[#allocation5 + $0x60] sm:$0xff]  ;;  %s1563_s13 = scalar_lea.hbm %s3311_s4, %s1658_s28 }
  0x4d   : > { %1897 = vmatprep.mubr.msk.f32.mxu0 %vm2477_vm0, %v3328_v0  ;;  %1932 = vmatprep.mubr.msk.f32.mxu1 %vm2477_vm0, %v3328_v0  ;;  %v240_v8 = vld [vmem:[#allocation5 + $0x58] sm:$0xff]  ;;  %v239_v9 = vld [vmem:[#allocation5 + $0x50] sm:$0xff]  ;;  %v2639_v10 = vand.u32 4294901760, %v241_v7  ;;  %v238_v13 = vld [vmem:[#allocation5 + $0x48] sm:$0xff]  ;;  %s227_s29 = scalar_lea.vmem [#allocation7], %s1652_s30  ;;  %s1552_s11 = scalar_lea.sflag [#allocation4], %s2611_s25 }
  0x4e   : > { %v2641_v11 = vand.u32 4294901760, %v240_v8  ;;  %v2643_v12 = vand.u32 4294901760, %v239_v9  ;;  %v237_v14 = vld [vmem:[#allocation5 + $0x40] sm:$0xff]  ;;  %1866 = vmatpush3.msra.mxu0 %v2633_v4  ;;  %v2647_v15 = vsub.f32 %v244_v1, %v2633_v4  ;;  %v2650_v16 = vsub.f32 %v243_v2, %v2635_v5  ;;  %v236_v19 = vld [vmem:[#allocation5 + $0x38] sm:$0xff]  ;;  %v235_v26 = vld [vmem:[#allocation5 + $0x30] sm:$0xff]  ;;  %s1565_s7 = sshll.u32 %s227_s29, 4  ;;  %s1566_s7 = int_to_ptr.vmem [resolvable:$true] %s1565_s7 }
  0x4f   : > { %v2652_v17 = vand.u32 4294901760, %v238_v13  ;;  %v2655_v18 = vsub.f32 %v242_v3, %v2637_v6  ;;  %1867 = vmatprep.subr.mxu0 %v3328_v0  ;;  %v2659_v20 = vsub.f32 %v241_v7, %v2639_v10  ;;  %v2674_v25 = vand.u32 4294901760, %v237_v14  ;;  %v234_v36 = vld [vmem:[#allocation5 + $0x28] sm:$0xff]  ;;  %v233_v41 = vld [vmem:[#allocation5 + $0x20] sm:$0xff]  ;;  %v232_v49 = vld [vmem:[#allocation5 + $0x18] sm:$0xff]  ;;  %s2402_s14 = scalar_lea.vmem %s1566_s7, 128 }
  0x50   : > { %v2662_v21 = vsub.f32 %v240_v8, %v2641_v11  ;;  %1868 = vmatpush3.msra.mxu0 %v2635_v5  ;;  %v2666_v22 = vand.u32 4294901760, %v2647_v15  ;;  %v2669_v23 = vand.u32 4294901760, %v2650_v16  ;;  %v2680_v28 = vand.u32 4294901760, %v236_v19  ;;  %v2734_v50 = vld [vmem:[%s2617_s6] sm:$0xff]  ;;  %v230_v60 = vld [vmem:[#allocation5 + $0x8] sm:$0xff]  ;;  %v229_v7 = vld [vmem:[#allocation5] sm:$0xff]  ;;  %p2403_p8 = scmp.ne.s32.totalorder %s1566_s7, %s2402_s14 }
  0x51   : > { %v2672_v24 = vand.u32 4294901760, %v2655_v18  ;;  %1869 = vmatprep.subr.mxu0 %v3328_v0  ;;  %v2678_v27 = vand.u32 4294901760, %v2659_v20  ;;  %v2686_v30 = vsub.f32 %v239_v9, %v2643_v12  ;;  %v2696_v34 = vsub.f32 %v238_v13, %v2652_v17  ;;  %3341 = vst [vmem:[#allocation11_spill] sm:$0xff] %v2734_v50  ;;  %v231_v54 = vld [vmem:[#allocation5 + $0x10] sm:$0xff]  ;;  %p3368_p3 = scmp.ne.s32.totalorder %s3335_s10, 0  ;;  %s2478_s20 = smov [#allocation7]  }
  0x52   : > { %v2683_v29 = vand.u32 4294901760, %v2662_v21  ;;  %1870 = vmatpush3.msra.mxu0 %v2637_v6  ;;  %v340_v31 = vsub.f32 %v2647_v15, %v2666_v22  ;;  %v347_v32 = vsub.f32 %v2650_v16, %v2669_v23  ;;  %v2699_v35 = vand.u32 4294901760, %v235_v26  ;;  %s2406_s5 = sshll.u32 %s2478_s20, 4  ;;  %s2407_s5 = int_to_ptr.vmem [resolvable:$false] %s2406_s5 }
  0x53   : > { %v354_v33 = vsub.f32 %v2655_v18, %v2672_v24  ;;  %1871 = vmatprep.subr.mxu0 %v3328_v0  ;;  %v361_v39 = vsub.f32 %v2659_v20, %v2678_v27  ;;  %v2709_v40 = vand.u32 4294901760, %v2686_v30  ;;  %v2715_v43 = vsub.f32 %v237_v14, %v2674_v25  ;;  %p2404_p11 = pnand %p2403_p8, %p3368_p3  ;;  %s2408_s19 = scalar_lea.vmem %s2407_s5, 256 }
  0x54   : > { %1872 = vmatpush3.msra.mxu0 %v2639_v10  ;;  %v2702_v37 = vand.u32 4294901760, %v340_v31  ;;  %v2704_v38 = vand.u32 4294901760, %v347_v32  ;;  %v368_v42 = vsub.f32 %v2662_v21, %v2683_v29  ;;  %v2721_v45 = vand.u32 4294901760, %v234_v36  ;;  %p2409_p10 = scmp.lt.s32.totalorder %s1566_s7, %s2407_s5  ;;  %p2410_p2 = scmp.lt.s32.totalorder %s2408_s19, %s2402_s14 }
  0x55   : > { %1873 = vmatprep.subr.mxu0 %v3328_v0  ;;  %v2719_v44 = vand.u32 4294901760, %v354_v33  ;;  %v2724_v46 = vand.u32 4294901760, %v2696_v34  ;;  %v2727_v47 = vsub.f32 %v236_v19, %v2680_v28  ;;  %v2731_v48 = vand.u32 4294901760, %v233_v41  ;;  %p2405_p7 = pneg %p2404_p11 }
  0x56   : > { %1874 = vmatpush3.msra.mxu0 %v2641_v11  ;;  %1901 = vmatpush3.msra.mxu1 %v2702_v37  ;;  %v2738_v51 = vand.u32 4294901760, %v361_v39  ;;  %v375_v52 = vsub.f32 %v2686_v30, %v2709_v40  ;;  %v2743_v53 = vand.u32 4294901760, %v2715_v43  ;;  %v2746_v55 = vsub.f32 %v235_v26, %v2699_v35  ;;  %p2411_p13 = por %p2410_p2, %p2409_p10 }
  0x57   : > { %1875 = vmatprep.subr.mxu0 %v3328_v0  ;;  %1902 = vmatprep.subr.mxu1 %v3328_v0  ;;  %v2750_v56 = vand.u32 4294901760, %v368_v42  ;;  %v2753_v57 = vand.u32 4294901760, %v2727_v47  ;;  %v382_v58 = vsub.f32 %v2696_v34, %v2724_v46  ;;  %v2759_v59 = vand.u32 4294901760, %v232_v49 }
  0x58   : > { %1876 = vmatpush3.msra.mxu0 %v2643_v12  ;;  %1903 = vmatpush3.msra.mxu1 %v2704_v38  ;;  %3342 = vst [vmem:[#allocation12_spill] sm:$0xff] %v2738_v51  ;;  %v2762_v61 = vsub.f32 %v234_v36, %v2721_v45  ;;  %v2765_v62 = vand.u32 4294901760, %v2734_v50  ;;  %v2769_v63 = vand.u32 4294901760, %v231_v54  ;;  %v2773_v1 = vand.u32 4294901760, %v375_v52  ;;  %p2412_p0 = pnand %p2411_p13, %p2405_p7 }
  0x59   : > { %1877 = vmatprep.subr.mxu0 %v3328_v0  ;;  %1904 = vmatprep.subr.mxu1 %v3328_v0  ;;  %3343 = vst [vmem:[#allocation13_spill] sm:$0xff] %v2750_v56  ;;  %v389_v2 = vsub.f32 %v2715_v43, %v2743_v53  ;;  %v2778_v3 = vand.u32 4294901760, %v2746_v55  ;;  %v2781_v8 = vsub.f32 %v233_v41, %v2731_v48  ;;  %v2787_v13 = vand.u32 4294901760, %v230_v60 }
  0x5a   : > { %1878 = vmatpush3.msra.mxu0 %v2652_v17  ;;  %1905 = vmatpush3.msra.mxu1 %v2719_v44  ;;  %3344 = vst [vmem:[#allocation14_spill] sm:$0xff] %v2773_v1  ;;  %v396_v9 = vsub.f32 %v2727_v47, %v2753_v57  ;;  %v2791_v14 = vand.u32 4294901760, %v382_v58  ;;  %v2794_v19 = vand.u32 4294901760, %v2762_v61  ;;  %v2798_v26 = vsub.f32 %v2734_v50, %v2765_v62 }
  0x5b   : > { %1879 = vmatprep.subr.mxu0 %v3328_v0  ;;  %1906 = vmatprep.subr.mxu1 %v3328_v0  ;;  %v2801_v31 = vsub.f32 %v232_v49, %v2759_v59  ;;  %v2805_v32 = vand.u32 4294901760, %v229_v7  ;;  %v2809_v33 = vand.u32 4294901760, %v389_v2  ;;  %v403_v36 = vsub.f32 %v2746_v55, %v2778_v3 }
  0x5c   : > { %1880 = vmatpush3.msra.mxu0 %v2674_v25  ;;  %1907 = vmatpush3.msra.mxu1 %v2738_v51  ;;  %3345 = vst [vmem:[#allocation15_spill] sm:$0xff] %v2791_v14  ;;  %v2814_v39 = vand.u32 4294901760, %v2781_v8  ;;  %v2817_v41 = vsub.f32 %v231_v54, %v2769_v63  ;;  %v2821_v42 = vand.u32 4294901760, %v396_v9  ;;  %v410_v49 = vsub.f32 %v2762_v61, %v2794_v19 }
  0x5d   : > { %1881 = vmatprep.subr.mxu0 %v3328_v0  ;;  %1908 = vmatprep.subr.mxu1 %v3328_v0  ;;  %3346 = vst [vmem:[#allocation16_spill] sm:$0xff] %v2809_v33  ;;  %v2829_v58 = vand.u32 4294901760, %v2801_v31  ;;  %v2832_v54 = vsub.f32 %v230_v60, %v2787_v13  ;;  %v2838_v2 = vand.u32 4294901760, %v403_v36  ;;  %v2846_v50 = vsub.f32 %v229_v7, %v2805_v32 }
  0x5e   : > { %1882 = vmatpush3.msra.mxu0 %v2680_v28  ;;  %1909 = vmatpush3.msra.mxu1 %v2750_v56  ;;  %3347 = vst [vmem:[#allocation17_spill] sm:$0xff] %v2821_v42  ;;  %v417_v9 = vsub.f32 %v2781_v8, %v2814_v39  ;;  %v2843_v52 = vand.u32 4294901760, %v2817_v41  ;;  %v2852_v60 = vand.u32 4294901760, %v410_v49  ;;  %v3351_v36 = vand.u32 4294901760, %v2798_v26 }
  0x5f   : > { %1883 = vmatprep.subr.mxu0 %v3328_v0  ;;  %1910 = vmatprep.subr.mxu1 %v3328_v0  ;;  %3348 = vst [vmem:[#allocation18_spill] sm:$0xff] %v2829_v58  ;;  %3349 = vst [vmem:[#allocation19_spill] sm:$0xff] %v2838_v2  ;;  %v2860_v7 = vand.u32 4294901760, %v2832_v54 }
  0x60   : > { %1884 = vmatpush3.msra.mxu0 %v2699_v35  ;;  %1911 = vmatpush3.msra.mxu1 %v2773_v1  ;;  %3350 = vst [vmem:[#allocation20_spill] sm:$0xff] %v2843_v52  ;;  %v2866_v49 = vand.u32 4294901760, %v417_v9 }
  0x61   : > { %1885 = vmatprep.subr.mxu0 %v3328_v0  ;;  %1912 = vmatprep.subr.mxu1 %v3328_v0  ;;  %3352 = vst [vmem:[#allocation21_spill] sm:$0xff] %v2860_v7  ;;  %v438_v9 = vsub.f32 %v2832_v54, %v2860_v7 }
  0x62   : > { %1886 = vmatpush3.msra.mxu0 %v2721_v45  ;;  %1913 = vmatpush3.msra.mxu1 %v2791_v14  ;;  %v424_v14 = vsub.f32 %v2801_v31, %v2829_v58 }
  0x63   : > { %1887 = vmatprep.subr.mxu0 %v3328_v0  ;;  %1914 = vmatprep.subr.mxu1 %v3328_v0 }
  0x64   : > { %1888 = vmatpush3.msra.mxu0 %v2731_v48  ;;  %1915 = vmatpush3.msra.mxu1 %v2809_v33  ;;  %v329_v33 = vsub.f32 %v2798_v26, %v3351_v36  ;;  %v2871_v36 = vand.u32 4294901760, %v2846_v50  ;;  %v2877_v56 = vand.u32 4294901760, %v424_v14  ;;  %v2892_v14 = vand.u32 4294901760, %v438_v9 }
  0x65   : > { %1889 = vmatprep.subr.mxu0 %v3328_v0  ;;  %1916 = vmatprep.subr.mxu1 %v3328_v0 }
  0x66   : > { %1890 = vmatpush3.msra.mxu0 %v2759_v59  ;;  %1917 = vmatpush3.msra.mxu1 %v2821_v42  ;;  %v431_v42 = vsub.f32 %v2817_v41, %v2843_v52  ;;  %3353 = vst [vmem:[#allocation22_spill] sm:$0xff] %v2871_v36  ;;  %v330_v1 = vand.u32 4294901760, %v329_v33  ;;  %v445_v51 = vsub.f32 %v2846_v50, %v2871_v36 }
  0x67   : > { %1891 = vmatprep.subr.mxu0 %v3328_v0  ;;  %1918 = vmatprep.subr.mxu1 %v3328_v0 }
  0x68   : > { %1892 = vmatpush3.msra.mxu0 %v2769_v63  ;;  %1919 = vmatpush3.msra.mxu1 %v2838_v2  ;;  %v2885_v2 = vand.u32 4294901760, %v431_v42  ;;  %v2898_v33 = vand.u32 4294901760, %v445_v51  ;;  %v3354_v51 = vand.u32 4294901760, %v2798_v26  ;;  %v3361_v42 = vld [vmem:[#allocation19_spill] sm:$0xff] }
  0x69   : > { %1893 = vmatprep.subr.mxu0 %v3328_v0  ;;  %1920 = vmatprep.subr.mxu1 %v3328_v0 }
  0x6a   : > { %1894 = vmatpush3.msra.mxu0 %v2787_v13  ;;  %1921 = vmatpush3.msra.mxu1 %v2852_v60 }
  0x6b   : > { %1895 = vmatprep.subr.mxu0 %v3328_v0  ;;  %1922 = vmatprep.subr.mxu1 %v3328_v0 }
  0x6c   : > { %1896 = vmatpush3.msra.mxu0 %v2805_v32  ;;  %1923 = vmatpush3.msra.mxu1 %v2866_v49 }
  0x6d   : > { %1924 = vmatprep.subr.mxu1 %v3328_v0  ;;  %1935 = vmatprep.subr.mxu0 %v3328_v0 }
  0x6e   : > { %1898 = vmatmul.mubr.f32.vlgmr.msra.gmra.mxu0 %v330_v1  ;;  %1925 = vmatpush3.msra.mxu1 %v2877_v56  ;;  %v3359_v1 = vld [vmem:[#allocation16_spill] sm:$0xff] }
  0x6f   : > { %1936 = vmatpush3.msra.mxu0 %v2647_v15  ;;  %1926 = vmatprep.subr.mxu1 %v3328_v0 }
  0x70   : > { %1937 = vmatprep.subr.mxu0 %v3328_v0  ;;  %1927 = vmatpush3.msra.mxu1 %v2885_v2 }
  0x71   : > { %1938 = vmatpush3.msra.mxu0 %v2650_v16  ;;  %1928 = vmatprep.subr.mxu1 %v3328_v0 }
  0x72   : > { %1939 = vmatprep.subr.mxu0 %v3328_v0  ;;  %1929 = vmatpush3.msra.mxu1 %v2892_v14 }
  0x73   : > { %1940 = vmatpush3.msra.mxu0 %v2655_v18  ;;  %1930 = vmatprep.subr.mxu1 %v3328_v0 }
  0x74   : > { %1941 = vmatprep.subr.mxu0 %v3328_v0  ;;  %1931 = vmatpush3.msra.mxu1 %v2898_v33 }
  0x75   : > { %1942 = vmatpush3.msra.mxu0 %v2659_v20  ;;  %1933 = vmatmul.mubr.f32.vlgmr.msra.gmra.mxu1 %v2765_v62 }
  0x76   : > { %1943 = vmatprep.subr.mxu0 %v3328_v0  ;;  %1970 = vmatprep.subr.mxu1 %v3328_v0 }
  0x77   : > { %1944 = vmatpush3.msra.mxu0 %v2662_v21  ;;  %1971 = vmatpush3.msra.mxu1 %v2633_v4 }
  0x78   : > { %1945 = vmatprep.subr.mxu0 %v3328_v0  ;;  %1972 = vmatprep.subr.mxu1 %v3328_v0 }
  0x79   : > { %1946 = vmatpush3.msra.mxu0 %v2686_v30  ;;  %1973 = vmatpush3.msra.mxu1 %v2635_v5 }
  0x7a   : > { %1947 = vmatprep.subr.mxu0 %v3328_v0  ;;  %1974 = vmatprep.subr.mxu1 %v3328_v0 }
  0x7b   : > { %1948 = vmatpush3.msra.mxu0 %v2696_v34  ;;  %1975 = vmatpush3.msra.mxu1 %v2637_v6 }
  0x7c   : > { %1949 = vmatprep.subr.mxu0 %v3328_v0  ;;  %1976 = vmatprep.subr.mxu1 %v3328_v0 }
  0x7d   : > { %1950 = vmatpush3.msra.mxu0 %v2715_v43  ;;  %1977 = vmatpush3.msra.mxu1 %v2639_v10 }
  0x7e   : > { %1951 = vmatprep.subr.mxu0 %v3328_v0  ;;  %1978 = vmatprep.subr.mxu1 %v3328_v0 }
  0x7f   : > { %1952 = vmatpush3.msra.mxu0 %v2727_v47  ;;  %1979 = vmatpush3.msra.mxu1 %v2641_v11 }
  0x80   : > { %1953 = vmatprep.subr.mxu0 %v3328_v0  ;;  %1980 = vmatprep.subr.mxu1 %v3328_v0 }
  0x81   : > { %1954 = vmatpush3.msra.mxu0 %v2746_v55  ;;  %1981 = vmatpush3.msra.mxu1 %v2643_v12 }
  0x82   : > { %1955 = vmatprep.subr.mxu0 %v3328_v0  ;;  %1982 = vmatprep.subr.mxu1 %v3328_v0 }
  0x83   : > { %1956 = vmatpush3.msra.mxu0 %v2762_v61  ;;  %1983 = vmatpush3.msra.mxu1 %v2652_v17 }
  0x84   : > { %1957 = vmatprep.subr.mxu0 %v3328_v0  ;;  %1984 = vmatprep.subr.mxu1 %v3328_v0 }
  0x85   : > { %1958 = vmatpush3.msra.mxu0 %v2781_v8  ;;  %1985 = vmatpush3.msra.mxu1 %v2674_v25 }
  0x86   : > { %1959 = vmatprep.subr.mxu0 %v3328_v0  ;;  %1986 = vmatprep.subr.mxu1 %v3328_v0 }
  0x87   : > { %1960 = vmatpush3.msra.mxu0 %v2801_v31  ;;  %1987 = vmatpush3.msra.mxu1 %v2680_v28 }
  0x88   : > { %1961 = vmatprep.subr.mxu0 %v3328_v0  ;;  %1988 = vmatprep.subr.mxu1 %v3328_v0 }
  0x89   : > { %1962 = vmatpush3.msra.mxu0 %v2817_v41  ;;  %1989 = vmatpush3.msra.mxu1 %v2699_v35 }
  0x8a   : > { %1963 = vmatprep.subr.mxu0 %v3328_v0  ;;  %1990 = vmatprep.subr.mxu1 %v3328_v0 }
  0x8b   : > { %1964 = vmatpush3.msra.mxu0 %v2832_v54  ;;  %1991 = vmatpush3.msra.mxu1 %v2721_v45 }
  0x8c   : > { %1965 = vmatprep.subr.mxu0 %v3328_v0  ;;  %1992 = vmatprep.subr.mxu1 %v3328_v0 }
  0x8d   : > { %1966 = vmatpush3.msra.mxu0 %v2846_v50  ;;  %1967 = vmatprep.mubr.msk.f32.mxu0 %vm2477_vm0, %v3328_v0 }
  0x8e   : > { %1993 = vmatpush3.msra.mxu1 %v2731_v48  ;;  %1968 = vmatmul.mubr.f32.vlgmr.msra.gmra.mxu0 %v2798_v26  ;;  %v3360_v26 = vld [vmem:[#allocation17_spill] sm:$0xff] }
  0x8f   : > { %1994 = vmatprep.subr.mxu1 %v3328_v0  ;;  %2005 = vmatprep.subr.mxu0 %v3328_v0 }
  0x90   : > { %1995 = vmatpush3.msra.mxu1 %v2759_v59  ;;  %2006 = vmatpush3.msra.mxu0 %v2666_v22 }
  0x91   : > { %1996 = vmatprep.subr.mxu1 %v3328_v0  ;;  %2007 = vmatprep.subr.mxu0 %v3328_v0 }
  0x92   : > { %1997 = vmatpush3.msra.mxu1 %v2769_v63  ;;  %2008 = vmatpush3.msra.mxu0 %v2669_v23 }
  0x93   : > { %1998 = vmatprep.subr.mxu1 %v3328_v0  ;;  %2009 = vmatprep.subr.mxu0 %v3328_v0 }
  0x94   : > { %1999 = vmatpush3.msra.mxu1 %v2787_v13  ;;  %2010 = vmatpush3.msra.mxu0 %v2672_v24 }
  0x95   : > { %2000 = vmatprep.subr.mxu1 %v3328_v0  ;;  %2011 = vmatprep.subr.mxu0 %v3328_v0 }
  0x96   : > { %2001 = vmatpush3.msra.mxu1 %v2805_v32  ;;  %2002 = vmatprep.mubr.msk.f32.mxu1 %vm2477_vm0, %v3328_v0 }
  0x97   : > { %2012 = vmatpush3.msra.mxu0 %v2678_v27  ;;  %2003 = vmatmul.mubr.f32.vlgmr.msra.gmra.mxu1 %v3354_v51 }
  0x98   : > { %2013 = vmatprep.subr.mxu0 %v3328_v0  ;;  %2040 = vmatprep.subr.mxu1 %v3328_v0 }
  0x99   : > { %2014 = vmatpush3.msra.mxu0 %v2683_v29  ;;  %2041 = vmatpush3.msra.mxu1 %v2633_v4 }
  0x9a   : > { %2015 = vmatprep.subr.mxu0 %v3328_v0  ;;  %2042 = vmatprep.subr.mxu1 %v3328_v0 }
  0x9b   : > { %2016 = vmatpush3.msra.mxu0 %v2709_v40  ;;  %2043 = vmatpush3.msra.mxu1 %v2635_v5 }
  0x9c   : > { %2017 = vmatprep.subr.mxu0 %v3328_v0  ;;  %2044 = vmatprep.subr.mxu1 %v3328_v0 }
  0x9d   : > { %2018 = vmatpush3.msra.mxu0 %v2724_v46  ;;  %2045 = vmatpush3.msra.mxu1 %v2637_v6 }
  0x9e   : > { %2019 = vmatprep.subr.mxu0 %v3328_v0  ;;  %2046 = vmatprep.subr.mxu1 %v3328_v0 }
  0x9f   : > { %2020 = vmatpush3.msra.mxu0 %v2743_v53  ;;  %2047 = vmatpush3.msra.mxu1 %v2639_v10 }
  0xa0   : > { %2021 = vmatprep.subr.mxu0 %v3328_v0  ;;  %2048 = vmatprep.subr.mxu1 %v3328_v0 }
  0xa1   : > { %2022 = vmatpush3.msra.mxu0 %v2753_v57  ;;  %2049 = vmatpush3.msra.mxu1 %v2641_v11 }
  0xa2   : > { %2023 = vmatprep.subr.mxu0 %v3328_v0  ;;  %2050 = vmatprep.subr.mxu1 %v3328_v0 }
  0xa3   : > { %2024 = vmatpush3.msra.mxu0 %v2778_v3  ;;  %2051 = vmatpush3.msra.mxu1 %v2643_v12 }
  0xa4   : > { %2025 = vmatprep.subr.mxu0 %v3328_v0  ;;  %2052 = vmatprep.subr.mxu1 %v3328_v0 }
  0xa5   : > { %2026 = vmatpush3.msra.mxu0 %v2794_v19  ;;  %2053 = vmatpush3.msra.mxu1 %v2652_v17 }
  0xa6   : > { %2027 = vmatprep.subr.mxu0 %v3328_v0  ;;  %2054 = vmatprep.subr.mxu1 %v3328_v0 }
  0xa7   : > { %2028 = vmatpush3.msra.mxu0 %v2814_v39  ;;  %2055 = vmatpush3.msra.mxu1 %v2674_v25 }
  0xa8   : > { %2029 = vmatprep.subr.mxu0 %v3328_v0  ;;  %2056 = vmatprep.subr.mxu1 %v3328_v0 }
  0xa9   : > { %2030 = vmatpush3.msra.mxu0 %v2829_v58  ;;  %2057 = vmatpush3.msra.mxu1 %v2680_v28  ;;  %v3362_v58 = vld [vmem:[#allocation11_spill] sm:$0xff] }
  0xaa   : > { %2031 = vmatprep.subr.mxu0 %v3328_v0  ;;  %2058 = vmatprep.subr.mxu1 %v3328_v0 }
  0xab   : > { %2032 = vmatpush3.msra.mxu0 %v2843_v52  ;;  %2059 = vmatpush3.msra.mxu1 %v2699_v35 }
  0xac   : > { %2033 = vmatprep.subr.mxu0 %v3328_v0  ;;  %2060 = vmatprep.subr.mxu1 %v3328_v0 }
  0xad   : > { %2034 = vmatpush3.msra.mxu0 %v2860_v7  ;;  %2061 = vmatpush3.msra.mxu1 %v2721_v45 }
  0xae   : > { %2035 = vmatprep.subr.mxu0 %v3328_v0  ;;  %2062 = vmatprep.subr.mxu1 %v3328_v0 }
  0xaf   : > { %2036 = vmatpush3.msra.mxu0 %v2871_v36  ;;  %2037 = vmatprep.mubr.msk.f32.mxu0 %vm2477_vm0, %v3328_v0 }
  0xb0   : > { %2063 = vmatpush3.msra.mxu1 %v2731_v48  ;;  %2038 = vmatmul.mubr.f32.vlgmr.msra.gmra.mxu0 %v2765_v62 }
  0xb1   : > { %2064 = vmatprep.subr.mxu1 %v3328_v0  ;;  %2072 = vmatprep.mubr.msk.f32.mxu1 %vm2477_vm0, %v3328_v0 }
  0xb2   : > { %2065 = vmatpush3.msra.mxu1 %v2759_v59  ;;  %2075 = vmatprep.subr.mxu0 %v3328_v0 }
  0xb3   : > { %2066 = vmatprep.subr.mxu1 %v3328_v0  ;;  %2076 = vmatpush3.msra.mxu0 %v2633_v4 }
  0xb4   : > { %2067 = vmatpush3.msra.mxu1 %v2769_v63  ;;  %2077 = vmatprep.subr.mxu0 %v3328_v0 }
  0xb5   : > { %2068 = vmatprep.subr.mxu1 %v3328_v0  ;;  %2078 = vmatpush3.msra.mxu0 %v2635_v5 }
  0xb6   : > { %2069 = vmatpush3.msra.mxu1 %v2787_v13  ;;  %2079 = vmatprep.subr.mxu0 %v3328_v0 }
  0xb7   : > { %2070 = vmatprep.subr.mxu1 %v3328_v0  ;;  %2080 = vmatpush3.msra.mxu0 %v2637_v6 }
  0xb8   : > { %2071 = vmatpush3.msra.mxu1 %v2805_v32  ;;  %2081 = vmatprep.subr.mxu0 %v3328_v0 }
  0xb9   : > { %2073 = vmatmul.mubr.f32.vlgmr.msra.gmra.mxu1 %v2765_v62  ;;  %2110 = vmatprep.subr.mxu1 %v3328_v0  ;;  %v3358_v62 = vld [vmem:[#allocation15_spill] sm:$0xff] }
  0xba   : > { %2111 = vmatpush3.msra.mxu1 %v2702_v37  ;;  %2082 = vmatpush3.msra.mxu0 %v2639_v10  ;;  %v3355_v37 = vld [vmem:[#allocation12_spill] sm:$0xff] }
  0xbb   : > { %2112 = vmatprep.subr.mxu1 %v3328_v0  ;;  %2083 = vmatprep.subr.mxu0 %v3328_v0 }
  0xbc   : > { %2113 = vmatpush3.msra.mxu1 %v2704_v38  ;;  %2084 = vmatpush3.msra.mxu0 %v2641_v11  ;;  %v3356_v38 = vld [vmem:[#allocation13_spill] sm:$0xff] }
  0xbd   : > { %2114 = vmatprep.subr.mxu1 %v3328_v0  ;;  %2085 = vmatprep.subr.mxu0 %v3328_v0 }
  0xbe   : > { %2115 = vmatpush3.msra.mxu1 %v2719_v44  ;;  %2086 = vmatpush3.msra.mxu0 %v2643_v12  ;;  %v3357_v44 = vld [vmem:[#allocation14_spill] sm:$0xff] }
  0xbf   : > { %2116 = vmatprep.subr.mxu1 %v3328_v0  ;;  %2087 = vmatprep.subr.mxu0 %v3328_v0 }
  0xc0   : > { %2117 = vmatpush3.msra.mxu1 %v3355_v37  ;;  %2088 = vmatpush3.msra.mxu0 %v2652_v17 }
  0xc1   : > { %2118 = vmatprep.subr.mxu1 %v3328_v0  ;;  %2089 = vmatprep.subr.mxu0 %v3328_v0 }
  0xc2   : > { %2119 = vmatpush3.msra.mxu1 %v3356_v38  ;;  %2090 = vmatpush3.msra.mxu0 %v2674_v25 }
  0xc3   : > { %2120 = vmatprep.subr.mxu1 %v3328_v0  ;;  %2091 = vmatprep.subr.mxu0 %v3328_v0 }
  0xc4   : > { %2121 = vmatpush3.msra.mxu1 %v3357_v44  ;;  %2092 = vmatpush3.msra.mxu0 %v2680_v28 }
  0xc5   : > { %2122 = vmatprep.subr.mxu1 %v3328_v0  ;;  %2093 = vmatprep.subr.mxu0 %v3328_v0 }
  0xc6   : > { %2123 = vmatpush3.msra.mxu1 %v3358_v62  ;;  %2094 = vmatpush3.msra.mxu0 %v2699_v35 }
  0xc7   : > { %2124 = vmatprep.subr.mxu1 %v3328_v0  ;;  %2095 = vmatprep.subr.mxu0 %v3328_v0 }
  0xc8   : > { %2125 = vmatpush3.msra.mxu1 %v3359_v1  ;;  %2096 = vmatpush3.msra.mxu0 %v2721_v45 }
  0xc9   : > { %2126 = vmatprep.subr.mxu1 %v3328_v0  ;;  %2097 = vmatprep.subr.mxu0 %v3328_v0 }
  0xca   : > { %2127 = vmatpush3.msra.mxu1 %v3360_v26  ;;  %2098 = vmatpush3.msra.mxu0 %v2731_v48 }
  0xcb   : > { %2128 = vmatprep.subr.mxu1 %v3328_v0  ;;  %2099 = vmatprep.subr.mxu0 %v3328_v0 }
  0xcc   : > { %2129 = vmatpush3.msra.mxu1 %v3361_v42  ;;  %2142 = vmatprep.mubr.msk.f32.mxu1 %vm2477_vm0, %v3328_v0 }
  0xcd   : > { %2130 = vmatprep.subr.mxu1 %v3328_v0  ;;  %2100 = vmatpush3.msra.mxu0 %v2759_v59 }
  0xce   : > { %2131 = vmatpush3.msra.mxu1 %v2852_v60  ;;  %2101 = vmatprep.subr.mxu0 %v3328_v0 }
  0xcf   : > { %2132 = vmatprep.subr.mxu1 %v3328_v0  ;;  %2102 = vmatpush3.msra.mxu0 %v2769_v63 }
  0xd0   : > { %2133 = vmatpush3.msra.mxu1 %v2866_v49  ;;  %2103 = vmatprep.subr.mxu0 %v3328_v0 }
  0xd1   : > { %2134 = vmatprep.subr.mxu1 %v3328_v0  ;;  %2104 = vmatpush3.msra.mxu0 %v2787_v13 }
  0xd2   : > { %2135 = vmatpush3.msra.mxu1 %v2877_v56  ;;  %2105 = vmatprep.subr.mxu0 %v3328_v0 }
  0xd3   : > { %2136 = vmatprep.subr.mxu1 %v3328_v0  ;;  %2106 = vmatpush3.msra.mxu0 %v2805_v32 }
  0xd4   : > { %2137 = vmatpush3.msra.mxu1 %v2885_v2  ;;  %2107 = vmatprep.mubr.msk.f32.mxu0 %vm2477_vm0, %v3328_v0 }
  0xd5   : > { %2138 = vmatprep.subr.mxu1 %v3328_v0  ;;  %2145 = vmatprep.subr.mxu0 %v3328_v0 }
  0xd6   : > { %2139 = vmatpush3.msra.mxu1 %v2892_v14 }
  0xd7   : > { %2140 = vmatprep.subr.mxu1 %v3328_v0 }
  0xd8   : > { %2141 = vmatpush3.msra.mxu1 %v2898_v33 }
  0xd9   : > { %2180 = vmatprep.subr.mxu1 %v3328_v0 }
 0x12e   : > { %v332_v56 = vpop.f32.mrf.mxu0 }
 0x130   : > { %v1899_v60 = vpop.f32.mrf.mxu0 }
 0x135   : > { %v483_v49 = vpop.f32.mrf.mxu1 }
 0x136   : > { %v484_v62 = vadd.f32 %v483_v49, %v332_v56  ;;  %v3363_v56 = vmov 0.0  }
 0x137   : > { %v1934_v9 = vpop.f32.mrf.mxu1 }
 0x14e   : > { %v587_v2 = vpop.f32.mrf.mxu0 }
 0x14f   : > { %v588_v26 = vadd.f32 %v587_v2, %v484_v62 }
 0x150   : > { %v1969_v51 = vpop.f32.mrf.mxu0 }
 0x157   : > { %v676_v37 = vpop.f32.mrf.mxu1 }
 0x158   : > { %v677_v42 = vadd.f32 %v676_v37, %v588_v26 }
 0x159   : > { %v2004_v38 = vpop.f32.mrf.mxu1 }
 0x170   : > { %v795_v44 = vpop.f32.mrf.mxu0 }
 0x171   : > { %v796_v14 = vadd.f32 %v795_v44, %v677_v42 }
 0x172   : > { %v2039_v1 = vpop.f32.mrf.mxu0 }
 0x179   : > { %v882_v36 = vpop.f32.mrf.mxu1 }
 0x17a   : > { %v883_v7 = vadd.f32 %v882_v36, %v796_v14 }
 0x17b   : > { %v2074_v52 = vpop.f32.mrf.mxu1 }
 0x17c   : > { %v886_v33 = vmul.f32 0.25, %v883_v7 }
 0x17e   : > { %v3114_v0 = vsub.f32 %v3362_v58, %v886_v33 }
 0x180   : > { %v888_v60 = vmul.f32 %v3114_v0, %v3114_v0 }
 0x182   : > { %v3118_v9 = vand.u32 4294901760, %v888_v60 }
 0x184   : > { %v3121_v51 = vsub.f32 %v888_v60, %v3118_v9  ;;  %2143 = vmatmul.mubr.f32.vlgmr.msra.gmra.mxu1 %v3118_v9 }
 0x185   : > { %2181 = vmatpush3.msra.mxu1 %v2633_v4  ;;  %2212 = vmatprep.mubr.msk.f32.mxu1 %vm2477_vm0, %v3363_v56 }
 0x186   : > { %2182 = vmatprep.subr.mxu1 %v3363_v56  ;;  %v972_v52 = vand.u32 4294901760, %v3121_v51 }
 0x187   : > { %2183 = vmatpush3.msra.mxu1 %v2635_v5 }
 0x188   : > { %2184 = vmatprep.subr.mxu1 %v3363_v56  ;;  %v973_v58 = vsub.f32 %v3121_v51, %v972_v52 }
 0x189   : > { %2185 = vmatpush3.msra.mxu1 %v2637_v6 }
 0x18a   : > { %2186 = vmatprep.subr.mxu1 %v3363_v56  ;;  %v974_v7 = vand.u32 4294901760, %v973_v58 }
 0x18b   : > { %2187 = vmatpush3.msra.mxu1 %v2639_v10 }
 0x18c   : > { %2188 = vmatprep.subr.mxu1 %v3363_v56  ;;  %2108 = vmatmul.mubr.f32.vlgmr.msra.gmra.mxu0 %v974_v7 }
 0x18d   : > { %2146 = vmatpush3.msra.mxu0 %v2647_v15  ;;  %2189 = vmatpush3.msra.mxu1 %v2641_v11 }
 0x18e   : > { %2147 = vmatprep.subr.mxu0 %v3363_v56  ;;  %2190 = vmatprep.subr.mxu1 %v3363_v56 }
 0x18f   : > { %2148 = vmatpush3.msra.mxu0 %v2650_v16  ;;  %2191 = vmatpush3.msra.mxu1 %v2643_v12 }
 0x190   : > { %2149 = vmatprep.subr.mxu0 %v3363_v56  ;;  %2192 = vmatprep.subr.mxu1 %v3363_v56 }
 0x191   : > { %2150 = vmatpush3.msra.mxu0 %v2655_v18  ;;  %2193 = vmatpush3.msra.mxu1 %v2652_v17 }
 0x192   : > { %2151 = vmatprep.subr.mxu0 %v3363_v56  ;;  %2194 = vmatprep.subr.mxu1 %v3363_v56 }
 0x193   : > { %2152 = vmatpush3.msra.mxu0 %v2659_v20  ;;  %2195 = vmatpush3.msra.mxu1 %v2674_v25 }
 0x194   : > { %2153 = vmatprep.subr.mxu0 %v3363_v56  ;;  %2196 = vmatprep.subr.mxu1 %v3363_v56 }
 0x195   : > { %2154 = vmatpush3.msra.mxu0 %v2662_v21  ;;  %2197 = vmatpush3.msra.mxu1 %v2680_v28 }
 0x196   : > { %2155 = vmatprep.subr.mxu0 %v3363_v56  ;;  %2198 = vmatprep.subr.mxu1 %v3363_v56 }
 0x197   : > { %2156 = vmatpush3.msra.mxu0 %v2686_v30  ;;  %2199 = vmatpush3.msra.mxu1 %v2699_v35 }
 0x198   : > { %2157 = vmatprep.subr.mxu0 %v3363_v56  ;;  %2200 = vmatprep.subr.mxu1 %v3363_v56 }
 0x199   : > { %2158 = vmatpush3.msra.mxu0 %v2696_v34  ;;  %2201 = vmatpush3.msra.mxu1 %v2721_v45 }
 0x19a   : > { %2159 = vmatprep.subr.mxu0 %v3363_v56  ;;  %2202 = vmatprep.subr.mxu1 %v3363_v56 }
 0x19b   : > { %2160 = vmatpush3.msra.mxu0 %v2715_v43  ;;  %2203 = vmatpush3.msra.mxu1 %v2731_v48 }
 0x19c   : > { %2161 = vmatprep.subr.mxu0 %v3363_v56  ;;  %2204 = vmatprep.subr.mxu1 %v3363_v56 }
 0x19d   : > { %2162 = vmatpush3.msra.mxu0 %v2727_v47  ;;  %2205 = vmatpush3.msra.mxu1 %v2759_v59  ;;  %v1656_v47 = vld [vmem:[%s3310_s3] ss:$0 sm:$0xff] }
 0x19e   : > { %2163 = vmatprep.subr.mxu0 %v3363_v56  ;;  %2206 = vmatprep.subr.mxu1 %v3363_v56 }
 0x19f   : > { %2164 = vmatpush3.msra.mxu0 %v2746_v55  ;;  %2207 = vmatpush3.msra.mxu1 %v2769_v63 }
 0x1a0   : > { %2165 = vmatprep.subr.mxu0 %v3363_v56  ;;  %2208 = vmatprep.subr.mxu1 %v3363_v56 }
 0x1a1   : > { %2166 = vmatpush3.msra.mxu0 %v2762_v61  ;;  %2209 = vmatpush3.msra.mxu1 %v2787_v13 }
 0x1a2   : > { %2167 = vmatprep.subr.mxu0 %v3363_v56  ;;  %2210 = vmatprep.subr.mxu1 %v3363_v56 }
 0x1a3   : > { %2168 = vmatpush3.msra.mxu0 %v2781_v8  ;;  %2211 = vmatpush3.msra.mxu1 %v2805_v32 }
 0x1a4   : > { %2169 = vmatprep.subr.mxu0 %v3363_v56  ;;  %2213 = vmatmul.mubr.f32.vlgmr.msra.gmra.mxu1 %v972_v52 }
 0x1a5   : > { %2250 = vmatprep.subr.mxu1 %v3363_v56  ;;  %2170 = vmatpush3.msra.mxu0 %v2801_v31 }
 0x1a6   : > { %2251 = vmatpush3.msra.mxu1 %v2633_v4  ;;  %2171 = vmatprep.subr.mxu0 %v3363_v56  ;;  %v3364_v4 = vld [vmem:[#allocation18_spill] sm:$0xff] }
 0x1a7   : > { %2252 = vmatprep.subr.mxu1 %v3363_v56  ;;  %2172 = vmatpush3.msra.mxu0 %v2817_v41 }
 0x1a8   : > { %2253 = vmatpush3.msra.mxu1 %v2635_v5  ;;  %2173 = vmatprep.subr.mxu0 %v3363_v56  ;;  %v3365_v5 = vld [vmem:[#allocation20_spill] sm:$0xff] }
 0x1a9   : > { %2254 = vmatprep.subr.mxu1 %v3363_v56  ;;  %2174 = vmatpush3.msra.mxu0 %v2832_v54 }
 0x1aa   : > { %2255 = vmatpush3.msra.mxu1 %v2637_v6  ;;  %2175 = vmatprep.subr.mxu0 %v3363_v56  ;;  %v3366_v6 = vld [vmem:[#allocation21_spill] sm:$0xff] }
 0x1ab   : > { %2256 = vmatprep.subr.mxu1 %v3363_v56  ;;  %2176 = vmatpush3.msra.mxu0 %v2846_v50 }
 0x1ac   : > { %2177 = vmatprep.mubr.msk.f32.mxu0 %vm2477_vm0, %v3363_v56  ;;  %2257 = vmatpush3.msra.mxu1 %v2639_v10  ;;  %v3367_v10 = vld [vmem:[#allocation22_spill] sm:$0xff] }
 0x1ad   : > { %2178 = vmatmul.mubr.f32.vlgmr.msra.gmra.mxu0 %v3121_v51  ;;  %2215 = vmatprep.subr.mxu0 %v3363_v56 }
 0x1ae   : > { %2258 = vmatprep.subr.mxu1 %v3363_v56  ;;  %2216 = vmatpush3.msra.mxu0 %v2666_v22 }
 0x1af   : > { %2259 = vmatpush3.msra.mxu1 %v2641_v11  ;;  %2217 = vmatprep.subr.mxu0 %v3363_v56 }
 0x1b0   : > { %2260 = vmatprep.subr.mxu1 %v3363_v56  ;;  %2218 = vmatpush3.msra.mxu0 %v2669_v23 }
 0x1b1   : > { %2261 = vmatpush3.msra.mxu1 %v2643_v12  ;;  %2219 = vmatprep.subr.mxu0 %v3363_v56 }
 0x1b2   : > { %2262 = vmatprep.subr.mxu1 %v3363_v56  ;;  %2220 = vmatpush3.msra.mxu0 %v2672_v24 }
 0x1b3   : > { %2263 = vmatpush3.msra.mxu1 %v2652_v17  ;;  %2221 = vmatprep.subr.mxu0 %v3363_v56 }
 0x1b4   : > { %2264 = vmatprep.subr.mxu1 %v3363_v56  ;;  %2222 = vmatpush3.msra.mxu0 %v2678_v27 }
 0x1b5   : > { %2265 = vmatpush3.msra.mxu1 %v2674_v25  ;;  %2223 = vmatprep.subr.mxu0 %v3363_v56 }
 0x1b6   : > { %2266 = vmatprep.subr.mxu1 %v3363_v56  ;;  %2224 = vmatpush3.msra.mxu0 %v2683_v29 }
 0x1b7   : > { %2267 = vmatpush3.msra.mxu1 %v2680_v28  ;;  %2225 = vmatprep.subr.mxu0 %v3363_v56 }
 0x1b8   : > { %2268 = vmatprep.subr.mxu1 %v3363_v56  ;;  %2226 = vmatpush3.msra.mxu0 %v2709_v40 }
 0x1b9   : > { %2269 = vmatpush3.msra.mxu1 %v2699_v35  ;;  %2227 = vmatprep.subr.mxu0 %v3363_v56 }
 0x1ba   : > { %2270 = vmatprep.subr.mxu1 %v3363_v56  ;;  %2228 = vmatpush3.msra.mxu0 %v2724_v46 }
 0x1bb   : > { %2271 = vmatpush3.msra.mxu1 %v2721_v45  ;;  %2229 = vmatprep.subr.mxu0 %v3363_v56  ;;  %v1655_v45 = vld [vmem:[%s3309_s2] ss:$0 sm:$0xff] }
 0x1bc   : > { %2272 = vmatprep.subr.mxu1 %v3363_v56  ;;  %2230 = vmatpush3.msra.mxu0 %v2743_v53 }
 0x1bd   : > { %2273 = vmatpush3.msra.mxu1 %v2731_v48  ;;  %2231 = vmatprep.subr.mxu0 %v3363_v56 }
 0x1be   : > { %2274 = vmatprep.subr.mxu1 %v3363_v56  ;;  %2232 = vmatpush3.msra.mxu0 %v2753_v57 }
 0x1bf   : > { %2275 = vmatpush3.msra.mxu1 %v2759_v59  ;;  %2233 = vmatprep.subr.mxu0 %v3363_v56 }
 0x1c0   : > { %2276 = vmatprep.subr.mxu1 %v3363_v56  ;;  %2234 = vmatpush3.msra.mxu0 %v2778_v3 }
 0x1c1   : > { %2277 = vmatpush3.msra.mxu1 %v2769_v63  ;;  %2235 = vmatprep.subr.mxu0 %v3363_v56 }
 0x1c2   : > { %2278 = vmatprep.subr.mxu1 %v3363_v56  ;;  %2236 = vmatpush3.msra.mxu0 %v2794_v19 }
 0x1c3   : > { %2279 = vmatpush3.msra.mxu1 %v2787_v13  ;;  %2237 = vmatprep.subr.mxu0 %v3363_v56 }
 0x1c4   : > { %2280 = vmatprep.subr.mxu1 %v3363_v56  ;;  %2238 = vmatpush3.msra.mxu0 %v2814_v39 }
 0x1c5   : > { %2281 = vmatpush3.msra.mxu1 %v2805_v32  ;;  %2282 = vmatprep.mubr.msk.f32.mxu1 %vm2477_vm0, %v3363_v56 }
 0x1c6   : > { %2239 = vmatprep.subr.mxu0 %v3363_v56  ;;  %2283 = vmatmul.mubr.f32.vlgmr.msra.gmra.mxu1 %v3118_v9 }
 0x1c7   : > { %2240 = vmatpush3.msra.mxu0 %v3364_v4  ;;  %2247 = vmatprep.mubr.msk.f32.mxu0 %vm2477_vm0, %v3363_v56 }
 0x1c8   : > { %2241 = vmatprep.subr.mxu0 %v3363_v56 }
 0x1c9   : > { %2242 = vmatpush3.msra.mxu0 %v3365_v5 }
 0x1ca   : > { %2243 = vmatprep.subr.mxu0 %v3363_v56 }
 0x1cb   : > { %2244 = vmatpush3.msra.mxu0 %v3366_v6 }
 0x1cc   : > { %2245 = vmatprep.subr.mxu0 %v3363_v56 }
 0x1cd   : > { %2246 = vmatpush3.msra.mxu0 %v3367_v10 }
 0x1ce   : > { %2248 = vmatmul.mubr.f32.vlgmr.msra.gmra.mxu0 %v3118_v9 }
 0x244   : > { %v1127_v11 = vpop.f32.mrf.mxu1 }
 0x246   : > { %v2144_v12 = vpop.f32.mrf.mxu1 }
 0x24c   : > { %v976_v15 = vpop.f32.mrf.mxu0 }
 0x24d   : > { %v1128_v23 = vadd.f32 %v1127_v11, %v976_v15 }
 0x24e   : > { %v2109_v16 = vpop.f32.mrf.mxu0 }
 0x264   : > { %v1320_v17 = vpop.f32.mrf.mxu1 }
 0x266   : > { %v2214_v18 = vpop.f32.mrf.mxu1 }
 0x26d   : > { %v1231_v20 = vpop.f32.mrf.mxu0 }
 0x26e   : > { %v1232_v25 = vadd.f32 %v1231_v20, %v1128_v23 }
 0x26f   : > { %v2179_v21 = vpop.f32.mrf.mxu0 }
 0x270   : > { %v1321_v27 = vadd.f32 %v1320_v17, %v1232_v25 }
 0x286   : > { %v1526_v22 = vpop.f32.mrf.mxu1 }
 0x288   : > { %v2284_v24 = vpop.f32.mrf.mxu1 }
 0x28e   : > { %v1439_v28 = vpop.f32.mrf.mxu0 }
 0x28f   : > { %v1440_v29 = vadd.f32 %v1439_v28, %v1321_v27 }
 0x290   : > { %v2249_v30 = vpop.f32.mrf.mxu0 }
 0x291   : > { %v1527_v34 = vadd.f32 %v1526_v22, %v1440_v29 }
 0x293   : > { %v1530_v35 = vmul.f32 0.25, %v1527_v34 }
 0x295   : > { %v1531_v40 = vadd.f32 1e-06, %v1530_v35 }
 0x297   : > { %2346 = vrsqrt.f32 %v1531_v40 }
 0x2a4   : > { %v2347_v43 = vpop.eup %2346 }
 0x2a5   : > { %v1533_v46 = vmul.f32 %v2347_v43, %v3114_v0 }
 0x2a7   : > { %v1541_v48 = vmul.f32 %v1655_v45, %v1533_v46 }
 0x2a9   : > { %v1549_v50 = vadd.f32 %v1656_v47, %v1541_v48 }
 0x2ab   : > { %1550 = vst [vmem:[%s227_s29] sm:$0xff] %v1549_v50 }
 0x2ac   : > { %2415 = shalt.err (!%p2412_p0)
}
 0x2ad   : > { %s2416_s30 = scalar_lea.hbm %s1563_s13, 128  ;;  %s2420_s21 = scalar_lea.hbm %s3311_s4, 256 }
 0x2ae   : > { %p2417_p5 = scmp.ne.s32.totalorder %s1563_s13, %s2416_s30  ;;  %p2421_p1 = scmp.lt.s32.totalorder %s1563_s13, %s3311_s4 }
 0x2af   : > { %p2422_p4 = scmp.lt.s32.totalorder %s2420_s21, %s2416_s30 }
 0x2b0   : > { %p2418_p9 = pnand %p2417_p5, %p3368_p3 }
 0x2b1   : > { %p2423_p6 = por %p2422_p4, %p2421_p1 }
 0x2b2   : > { %p2419_p12 = pneg %p2418_p9 }
 0x2b4   : > { %p2424_p8 = pnand %p2423_p6, %p2419_p12 }
 0x2b6   : > { %2427 = shalt.err (!%p2424_p8)
}
 0x2b7   : > { %2291 = dma.vmem_to_hbm [thread:$0]  (%p3368_p3), %s1566_s7, 128, %s1563_s13, %s1552_s11  }
 0x2b8 PF: > { %s1577_s26 = sand.u32 1, %s2458_s15   ;;  %p3369_p11 = scmp.ne.s32.totalorder %s3331_s22, 0 }
 0x2b9   : > { %p3370_p7 = scmp.ge.s32.totalorder %s2470_s18, 2  ;;  %s1578_s28 = scalar_lea.sflag [#allocation4], %s1577_s26 }
 0x2bb   : > { %p2302_p10 = pnand %p3370_p7, %p3369_p11 }
 0x2bd   : > { %p2303_p2 = pneg %p2302_p10 }
 0x2bf   : > { %2453 = dma.done.wait (%p2303_p2), %s1578_s28, 128  }
 0x2c0   : > { %2455 = vsyncadd (%p2303_p2), %s1578_s28, 4294967168  ;;  %p18_p13 = scmp.ge.s32.totalorder %s2558_s27, 4   ;;  %s3371_s15 = smov %s2462_s16 }
 0x2c1   : > { %s3372_s16 = smov %s2466_s17  ;;  %s3373_s17 = smov %s2575_s9 }
 0x2c2   : > { %s3374_s18 = smov %s2558_s27  ;;  %20 = sbr.rel (!%p18_p13) target bundleno = 6 (0x6), region = 85 }
 0x2c7   :  { %1583 = vsyncpa [#allocation3], 1 }
 0x2c8   :  { %1585 = vsyncpa [#allocation3 + $0x1], 1 }
 0x2c9   :  { %1586 = vsyncpa [#allocation6], 1 }
 0x2ca   :  { %1587 = vsyncpa [#allocation4], 1 }
 0x2cb   :  { %1589 = vsyncpa [#allocation4 + $0x1], 1 }

</bundles_post_ra>
